<compile_context>
chip_gen: v6e
topology: v6e:2x2x1
jax: 0.10.0
libtpu: 0.0.40
codegen_flags: <defaults>
</compile_context>

<pallas_src>
import functools

import jax
import jax.numpy as jnp
from jax.experimental import pallas as pl
from jax.experimental.pallas import tpu as pltpu


def _round_up(x, m):
    return (x + m - 1) // m * m


# ----------------------------------------------------------------------------
# Direct path: whole (TB, D) rows per block.
# ----------------------------------------------------------------------------
def _contrastive_kernel_direct(l_ref, u_ref, out_ref, *, total_b, tb,
                               tiles_per_split, needs_mask):
    s = pl.program_id(0)   # core-split axis ("parallel")
    i = pl.program_id(1)   # row-tile reduction axis ("arbitrary")

    @pl.when(i == 0)
    def _():
        out_ref[...] = jnp.zeros_like(out_ref)

    l = l_ref[...].astype(jnp.float32)
    u = u_ref[...].astype(jnp.float32)

    # F.normalize(p=2, dim=1): x / max(||x||_2, 1e-12)
    #   == x * rsqrt(max(||x||_2^2, 1e-24))   (exactly, by monotonicity)
    l_inv = jax.lax.rsqrt(jnp.maximum(jnp.sum(l * l, axis=1, keepdims=True),
                                      1e-24))
    u_inv = jax.lax.rsqrt(jnp.maximum(jnp.sum(u * u, axis=1, keepdims=True),
                                      1e-24))

    # F.pairwise_distance(p=2, eps=1e-6) then **2  ==  sum((l_n - u_n + 1e-6)^2)
    d = l * l_inv - u * u_inv + 1e-6
    dist_sq = jnp.sum(d * d, axis=1, keepdims=True)          # (TB, 1)

    if needs_mask:
        tile_idx = s * tiles_per_split + i
        row_ids = tile_idx * tb + jax.lax.broadcasted_iota(
            jnp.int32, (tb, 1), 0)
        dist_sq = jnp.where(row_ids < total_b, dist_sq, 0.0)

    # Accumulate into the resident, lane-dense output block.
    out_ref[...] += jnp.sum(dist_sq)


# ----------------------------------------------------------------------------
# D-tiled path: (TB, TD) blocks, per-row moments accumulated across D tiles.
# ----------------------------------------------------------------------------
def _contrastive_kernel_dtiled(l_ref, u_ref, out_ref,
                               ll_acc, uu_acc, lu_acc, sl_acc, su_acc, *,
                               total_b, true_d, tb, tiles_per_split,
                               needs_mask):
    s = pl.program_id(0)   # core-split axis       ("parallel")
    i = pl.program_id(1)   # row-tile reduction    ("arbitrary")
    k = pl.program_id(2)   # D-tile reduction      ("arbitrary", innermost)
    nk = pl.num_programs(2)

    @pl.when((i == 0) & (k == 0))
    def _():
        out_ref[...] = jnp.zeros_like(out_ref)

    @pl.when(k == 0)
    def _():
        ll_acc[...] = jnp.zeros_like(ll_acc)
        uu_acc[...] = jnp.zeros_like(uu_acc)
        lu_acc[...] = jnp.zeros_like(lu_acc)
        sl_acc[...] = jnp.zeros_like(sl_acc)
        su_acc[...] = jnp.zeros_like(su_acc)

    l = l_ref[...].astype(jnp.float32)
    u = u_ref[...].astype(jnp.float32)

    ll_acc[...] += jnp.sum(l * l, axis=1, keepdims=True)
    uu_acc[...] += jnp.sum(u * u, axis=1, keepdims=True)
    lu_acc[...] += jnp.sum(l * u, axis=1, keepdims=True)
    sl_acc[...] += jnp.sum(l, axis=1, keepdims=True)
    su_acc[...] += jnp.sum(u, axis=1, keepdims=True)

    @pl.when(k == nk - 1)
    def _():
        eps = jnp.float32(1e-6)
        nl = jax.lax.rsqrt(jnp.maximum(ll_acc[...], 1e-24))
        nu = jax.lax.rsqrt(jnp.maximum(uu_acc[...], 1e-24))
        # ||l*nl - u*nu + eps||^2 over the true D columns (zero-padded columns
        # contribute 0 to every accumulated moment).
        dist_sq = (ll_acc[...] * nl * nl
                   + uu_acc[...] * nu * nu
                   - 2.0 * nl * nu * lu_acc[...]
                   + 2.0 * eps * (nl * sl_acc[...] - nu * su_acc[...])
                   + jnp.float32(true_d) * eps * eps)           # (TB, 1)

        if needs_mask:
            tile_idx = s * tiles_per_split + i
            row_ids = tile_idx * tb + jax.lax.broadcasted_iota(
                jnp.int32, (tb, 1), 0)
            dist_sq = jnp.where(row_ids < total_b, dist_sq, 0.0)

        out_ref[...] += jnp.sum(dist_sq)


# ----------------------------------------------------------------------------
# Wrapper
# ----------------------------------------------------------------------------
def contrastive_loss(labeled_features, unlabeled_features, margin=1.0,
                     weight=1.0, max_block_bytes=4 * 1024 * 1024):
    """JAX/Pallas equivalent of ContrastiveLoss.forward. Returns a scalar f32.

    max_block_bytes bounds a single pipelined input buffer (each input is
    double-buffered by the BlockSpec pipeline, so VMEM use is ~4x this).
    """
    del margin  # unused in the forward pass (kept for interface parity)

    b = labeled_features.shape[0]
    # Keep native dtype for the HBM->VMEM DMA; cast to f32 inside the kernel.
    l2d = labeled_features.reshape(b, -1)
    u2d = unlabeled_features.reshape(b, -1)
    assert l2d.shape == u2d.shape, "inputs must flatten to the same (B, D)"
    B, D = l2d.shape
    itemsize = jnp.dtype(l2d.dtype).itemsize
    sub = max(8, 32 // itemsize)          # sublane multiple: 8/16/32 for 4/2/1B

    use_dtiled = D * itemsize * sub > max_block_bytes

    if not use_dtiled:
        # Whole rows fit with >= `sub` rows per block.
        td, k_tiles, d_pad = D, 1, D
        tb = max_block_bytes // max(1, D * itemsize)
        tb = int(max(sub, min(tb // sub * sub, 1024, _round_up(B, sub))))
    else:
        # D-tiling: small row-tile, lane-aligned column tile within the budget.
        tb = sub
        td = max_block_bytes // (tb * itemsize)
        td = int(max(128, min(td // 128 * 128, _round_up(D, 128))))
        k_tiles = pl.cdiv(D, td)
        d_pad = k_tiles * td

    n_tiles = pl.cdiv(B, tb)
    n_splits = 2 if n_tiles >= 2 else 1    # megacore split (v7x has 2 TCs)
    tiles_per_split = pl.cdiv(n_tiles, n_splits)
    b_pad = n_splits * tiles_per_split * tb

    if b_pad != B or d_pad != D:
        pad = ((0, b_pad - B), (0, d_pad - D))
        l2d = jnp.pad(l2d, pad)
        u2d = jnp.pad(u2d, pad)

    needs_mask = (b_pad != B)
    out_shape = jax.ShapeDtypeStruct((n_splits, 8, 128), jnp.float32)

    if not use_dtiled:
        kernel = functools.partial(
            _contrastive_kernel_direct,
            total_b=B, tb=tb, tiles_per_split=tiles_per_split,
            needs_mask=needs_mask)

        def in_map(s, i):
            return (s * tiles_per_split + i, 0)

        partial_sums = pl.pallas_call(
            kernel,
            out_shape=out_shape,
            grid=(n_splits, tiles_per_split),
            in_specs=[pl.BlockSpec((tb, D), in_map),
                      pl.BlockSpec((tb, D), in_map)],
            out_specs=pl.BlockSpec((1, 8, 128), lambda s, i: (s, 0, 0)),
            compiler_params=pltpu.CompilerParams(
                dimension_semantics=("parallel", "arbitrary"),
                vmem_limit_bytes=32 * 1024 * 1024,
            ),
        )(l2d, u2d)
    else:
        kernel = functools.partial(
            _contrastive_kernel_dtiled,
            total_b=B, true_d=D, tb=tb, tiles_per_split=tiles_per_split,
            needs_mask=needs_mask)

        def in_map(s, i, k):
            return (s * tiles_per_split + i, k)

        partial_sums = pl.pallas_call(
            kernel,
            out_shape=out_shape,
            grid=(n_splits, tiles_per_split, k_tiles),
            in_specs=[pl.BlockSpec((tb, td), in_map),
                      pl.BlockSpec((tb, td), in_map)],
            out_specs=pl.BlockSpec((1, 8, 128), lambda s, i, k: (s, 0, 0)),
            scratch_shapes=[pltpu.VMEM((tb, 1), jnp.float32)] * 5,
            compiler_params=pltpu.CompilerParams(
                dimension_semantics=("parallel", "arbitrary", "arbitrary"),
                vmem_limit_bytes=32 * 1024 * 1024,
            ),
        )(l2d, u2d)

    # Each split's block holds its partial sum broadcast over (8, 128);
    # take one element per split, combine, then mean over the true B and scale.
    total = jnp.sum(partial_sums[:, 0, 0])
    return (total / B) * weight


def _reference(labeled, unlabeled, weight=1.0):
    b = labeled.shape[0]
    l = labeled.reshape(b, -1).astype(jnp.float32)
    u = unlabeled.reshape(b, -1).astype(jnp.float32)
    l = l / jnp.maximum(jnp.linalg.norm(l, axis=1, keepdims=True), 1e-12)
    u = u / jnp.maximum(jnp.linalg.norm(u, axis=1, keepdims=True), 1e-12)
    dist = jnp.sqrt(jnp.sum((l - u + 1e-6) ** 2, axis=1))
    return jnp.mean(dist ** 2) * weight


if __name__ == "__main__":
    key = jax.random.PRNGKey(0)
    k1, k2, k3, k4, k5, k6 = jax.random.split(key, 6)

    # 1) Typical NCHW feature maps, direct path (B=2, D=1024) + row-pad masking.
    lab = jax.random.normal(k1, (2, 4, 16, 16), dtype=jnp.float32)
    unl = jax.random.normal(k2, (2, 4, 16, 16), dtype=jnp.float32)
    loss = jax.block_until_ready(contrastive_loss(lab, unl, margin=1.0,
                                                  weight=1.0))
    ref = _reference(lab, unl, 1.0)
    assert jnp.allclose(loss, ref, rtol=1e-5, atol=1e-6), (loss, ref)

    # 2) Multi row-tile + megacore split (forced small block budget), direct path.
    lab2 = jax.random.normal(k3, (40, 4, 16, 16), dtype=jnp.float32)
    unl2 = jax.random.normal(k4, (40, 4, 16, 16), dtype=jnp.float32)
    loss2 = jax.block_until_ready(
        contrastive_loss(lab2, unl2, weight=0.5, max_block_bytes=64 * 1024))
    ref2 = _reference(lab2, unl2, 0.5)
    assert jnp.allclose(loss2, ref2, rtol=1e-5, atol=1e-6), (loss2, ref2)

    # 3) D-tiled (algebraic) path with ragged D and ragged B (forced tiny budget).
    lab3 = jax.random.normal(k5, (5, 3, 10, 10), dtype=jnp.float32)
    unl3 = jax.random.normal(k6, (5, 3, 10, 10), dtype=jnp.float32)
    loss3 = jax.block_until_ready(
        contrastive_loss(lab3, unl3, weight=2.0, max_block_bytes=8 * 1024))
    ref3 = _reference(lab3, unl3, 2.0)
    assert jnp.allclose(loss3, ref3, rtol=2e-5, atol=1e-5), (loss3, ref3)

    print("KERNEL_OK")
</pallas_src>

<mosaic_0001>
module attributes {stable_mosaic.version = 11 : i64} {
  func.func @_contrastive_kernel_direct(%arg0: i32, %arg1: i32, %arg2: memref<8x1024xf32, #tpu.memory_space<vmem>>, %arg3: memref<8x1024xf32, #tpu.memory_space<vmem>>, %arg4: memref<1x8x128xf32, #tpu.memory_space<vmem>>) attributes {dimension_semantics = [#tpu.dimension_semantics<parallel>, #tpu.dimension_semantics<arbitrary>], iteration_bounds = array<i64: 1, 1>, scalar_prefetch = 0 : i64, scratch_operands = 0 : i64, tpu.core_type = #tpu.core_type<tc>, window_params = [{transform_indices = @transform_0, window_bounds = array<i64: 8, 1024>}, {transform_indices = @transform_1, window_bounds = array<i64: 8, 1024>}, {transform_indices = @transform_2, window_bounds = array<i64: 1, 8, 128>}]} {
    %c0_i32 = arith.constant 0 : i32
    %0 = arith.cmpi eq, %arg1, %c0_i32 : i32
    %1 = arith.extui %0 : i1 to i32
    %c0_i32_0 = arith.constant 0 : i32
    %2 = arith.cmpi ne, %1, %c0_i32_0 : i32
    scf.if %2 {
      %cst_17 = arith.constant 0.000000e+00 : f32
      %45 = vector.broadcast %cst_17 : f32 to vector<1x8x128xf32>
      %c0_18 = arith.constant 0 : index
      %c0_19 = arith.constant 0 : index
      %c0_20 = arith.constant 0 : index
      %46 = vector.load %arg4[%c0_18, %c0_19, %c0_20] : memref<1x8x128xf32, #tpu.memory_space<vmem>>, vector<1x8x128xf32>
      tpu.vector_store %arg4[%c0_18, %c0_19, %c0_20], %45 {strides = array<i32>} : memref<1x8x128xf32, #tpu.memory_space<vmem>>, vector<1x8x128xf32>,
    } else {
    }
    %c0 = arith.constant 0 : index
    %c0_1 = arith.constant 0 : index
    %3 = vector.load %arg2[%c0, %c0_1] : memref<8x1024xf32, #tpu.memory_space<vmem>>, vector<8x1024xf32>
    %c0_2 = arith.constant 0 : index
    %c0_3 = arith.constant 0 : index
    %4 = vector.load %arg3[%c0_2, %c0_3] : memref<8x1024xf32, #tpu.memory_space<vmem>>, vector<8x1024xf32>
    %5 = arith.mulf %3, %3 : vector<8x1024xf32>
    %cst = arith.constant dense<0.000000e+00> : vector<8xf32>
    %6 = vector.multi_reduction <add>, %5, %cst [1] : vector<8x1024xf32> to vector<8xf32>
    %7 = vector.shape_cast %6 : vector<8xf32> to vector<8x1xf32>
    %cst_4 = arith.constant 1.000000e-24 : f32
    %8 = vector.broadcast %cst_4 : f32 to vector<8x1xf32>
    %9 = arith.maximumf %7, %8 : vector<8x1xf32>
    %10 = math.rsqrt %9 : vector<8x1xf32>
    %11 = arith.mulf %4, %4 : vector<8x1024xf32>
    %cst_5 = arith.constant dense<0.000000e+00> : vector<8xf32>
    %12 = vector.multi_reduction <add>, %11, %cst_5 [1] : vector<8x1024xf32> to vector<8xf32>
    %13 = vector.shape_cast %12 : vector<8xf32> to vector<8x1xf32>
    %cst_6 = arith.constant 1.000000e-24 : f32
    %14 = vector.broadcast %cst_6 : f32 to vector<8x1xf32>
    %15 = arith.maximumf %13, %14 : vector<8x1xf32>
    %16 = math.rsqrt %15 : vector<8x1xf32>
    %17 = vector.broadcast %10 : vector<8x1xf32> to vector<8x1024xf32>
    %18 = arith.mulf %3, %17 : vector<8x1024xf32>
    %19 = vector.broadcast %16 : vector<8x1xf32> to vector<8x1024xf32>
    %20 = arith.mulf %4, %19 : vector<8x1024xf32>
    %21 = arith.subf %18, %20 : vector<8x1024xf32>
    %cst_7 = arith.constant 9.99999997E-7 : f32
    %22 = vector.broadcast %cst_7 : f32 to vector<8x1024xf32>
    %23 = arith.addf %21, %22 : vector<8x1024xf32>
    %24 = arith.mulf %23, %23 : vector<8x1024xf32>
    %cst_8 = arith.constant dense<0.000000e+00> : vector<8xf32>
    %25 = vector.multi_reduction <add>, %24, %cst_8 [1] : vector<8x1024xf32> to vector<8xf32>
    %26 = vector.shape_cast %25 : vector<8xf32> to vector<8x1xf32>
    %c1_i32 = arith.constant 1 : i32
    %27 = arith.muli %arg0, %c1_i32 : i32
    %28 = arith.addi %27, %arg1 : i32
    %c8_i32 = arith.constant 8 : i32
    %29 = arith.muli %28, %c8_i32 : i32
    %30 = tpu.iota {dimensions = array<i32: 0>} : vector<8x1xi32>
    %31 = vector.broadcast %29 : i32 to vector<8x1xi32>
    %32 = arith.addi %31, %30 : vector<8x1xi32>
    %c2_i32 = arith.constant 2 : i32
    %33 = vector.broadcast %c2_i32 : i32 to vector<8x1xi32>
    %34 = arith.cmpi slt, %32, %33 : vector<8x1xi32>
    %cst_9 = arith.constant 0.000000e+00 : f32
    %35 = vector.broadcast %cst_9 : f32 to vector<8x1xf32>
    %36 = arith.select %34, %26, %35 : vector<8x1xi1>, vector<8x1xf32>
    %c0_10 = arith.constant 0 : index
    %c0_11 = arith.constant 0 : index
    %c0_12 = arith.constant 0 : index
    %37 = vector.load %arg4[%c0_10, %c0_11, %c0_12] : memref<1x8x128xf32, #tpu.memory_space<vmem>>, vector<1x8x128xf32>
    %38 = vector.shape_cast %36 : vector<8x1xf32> to vector<1x8x1xf32>
    %cst_13 = arith.constant dense<0.000000e+00> : vector<1xf32>
    %39 = vector.multi_reduction <add>, %38, %cst_13 [1, 2] : vector<1x8x1xf32> to vector<1xf32>
    %40 = vector.shape_cast %39 : vector<1xf32> to vector<1x1x1xf32>
    %41 = vector.extract %40[0, 0, 0] : f32 from vector<1x1x1xf32>
    %42 = vector.broadcast %41 : f32 to vector<1x8x128xf32>
    %43 = arith.addf %37, %42 : vector<1x8x128xf32>
    %c0_14 = arith.constant 0 : index
    %c0_15 = arith.constant 0 : index
    %c0_16 = arith.constant 0 : index
    %44 = vector.load %arg4[%c0_14, %c0_15, %c0_16] : memref<1x8x128xf32, #tpu.memory_space<vmem>>, vector<1x8x128xf32>
    tpu.vector_store %arg4[%c0_14, %c0_15, %c0_16], %43 {strides = array<i32>} : memref<1x8x128xf32, #tpu.memory_space<vmem>>, vector<1x8x128xf32>,
    return
  }
  func.func @transform_0(%arg0: i32, %arg1: i32) -> (i32, i32) {
    %c1_i32 = arith.constant 1 : i32
    %0 = arith.muli %arg0, %c1_i32 : i32
    %1 = arith.addi %0, %arg1 : i32
    %c0_i32 = arith.constant 0 : i32
    %c0_i32_0 = arith.constant 0 : i32
    return %1, %c0_i32 : i32, i32
  }
  func.func @transform_1(%arg0: i32, %arg1: i32) -> (i32, i32) {
    %c1_i32 = arith.constant 1 : i32
    %0 = arith.muli %arg0, %c1_i32 : i32
    %1 = arith.addi %0, %arg1 : i32
    %c0_i32 = arith.constant 0 : i32
    %c0_i32_0 = arith.constant 0 : i32
    return %1, %c0_i32 : i32, i32
  }
  func.func @transform_2(%arg0: i32, %arg1: i32) -> (i32, i32, i32) {
    %c0_i32 = arith.constant 0 : i32
    %c0_i32_0 = arith.constant 0 : i32
    %c0_i32_1 = arith.constant 0 : i32
    return %arg0, %c0_i32, %c0_i32_0 : i32, i32, i32
  }
}

</mosaic_0001>

<bundles_post_ra>
// kernel: tpu_custom_call.1
= control target key start
LH: loop header
LB: loop body
LE: loop exit
PB: predicated region body
PF: predicated region fallthrough
CT: control target
= control target key end

     0   :  { %7 = vsyncpa [#allocation3], 0  ;;  %s296_s0 = inlined_call_operand.hbm [shape: f32[8,1024], index: 0, kind: input, shape index: {}]   ;;  %s297_s1 = inlined_call_operand.hbm [shape: f32[8,1024], index: 1, kind: input, shape index: {}]   ;;  %s298_s2 = inlined_call_operand.hbm [shape: f32[1,8,128], index: 2, kind: output, shape index: {}]  }
   0x1   :  { %8 = vsyncpa [#allocation6], 0 }
   0x2   :  { %9 = vsyncpa [#allocation4], 0  ;;  %s269_s9 = smov [#allocation2]   ;;  %s270_s11 = smov [#allocation5]  }
   0x3   :  { %s20_s10 = sshll.u32 %s269_s9, 4  ;;  %s34_s12 = sshll.u32 %s270_s11, 4  ;;  %s21_s10 = int_to_ptr.vmem [resolvable:$true] %s20_s10  ;;  %s35_s12 = int_to_ptr.vmem [resolvable:$true] %s34_s12 }
   0x4   :  { %s211_s13 = scalar_lea.vmem %s21_s10, 1024  ;;  %p216_p1 = scmp.lt.s32.totalorder %s21_s10, %s21_s10 }
   0x5   :  { %p212_p0 = scmp.ne.s32.totalorder %s21_s10, %s211_s13  ;;  %p217_p2 = scmp.lt.s32.totalorder %s211_s13, %s211_s13 }
   0x7   :  { %p218_p3 = por %p217_p2, %p216_p1 }
   0x9   :  { %p219_p4 = pnand %p218_p3, %p212_p0 }
   0xb   :  { %222 = shalt.err (!%p219_p4)
}
   0xc   :  { %23 = dma.hbm_to_vmem [thread:$0]  %s296_s0, 1024, %s21_s10, [#allocation3]  }
   0xd   :  { %s231_s16 = scalar_lea.vmem %s35_s12, 1024  ;;  %p236_p6 = scmp.lt.s32.totalorder %s35_s12, %s35_s12 }
   0xe   :  { %p232_p5 = scmp.ne.s32.totalorder %s35_s12, %s231_s16  ;;  %p237_p7 = scmp.lt.s32.totalorder %s231_s16, %s231_s16 }
  0x10   :  { %p238_p8 = por %p237_p7, %p236_p6 }
  0x12   :  { %p239_p9 = pnand %p238_p8, %p232_p5 }
  0x14   :  { %242 = shalt.err (!%p239_p9)
}
  0x15   :  { %37 = dma.hbm_to_vmem [thread:$0]  %s297_s1, 1024, %s35_s12, [#allocation6]  }
  0x16   :  { %263 = dma.done.wait [#allocation3], 1024  }
  0x17   :  { %264 = vsyncadd [#allocation3], 4294966272 }
  0x18   :  { %265 = dma.done.wait [#allocation6], 1024  }
  0x19   :  { %266 = vsyncadd [#allocation6], 4294966272  ;;  %v51_v0 = vld [vmem:[#allocation2] sm:$0xff]  ;;  %v52_v1 = vld [vmem:[#allocation2 + $0x8] sm:$0xff]  ;;  %vm163_vm1 = vcmask 7168   ;;  %s271_s0 = smov [#allocation7]  }
  0x1a   :  { %v53_v2 = vld [vmem:[#allocation2 + $0x10] sm:$0xff]  ;;  %v54_v3 = vld [vmem:[#allocation2 + $0x18] sm:$0xff]  ;;  %v67_v4 = vmul.f32 %v51_v0, %v51_v0  ;;  %v68_v5 = vmul.f32 %v52_v1, %v52_v1  ;;  %v55_v7 = vld [vmem:[#allocation2 + $0x20] sm:$0xff]  ;;  %s183_s1 = sshll.u32 %s271_s0, 4  ;;  %s184_s1 = int_to_ptr.vmem [resolvable:$true] %s183_s1 }
  0x1b   :  { %v69_v6 = vmul.f32 %v53_v2, %v53_v2  ;;  %v59_v8 = vld [vmem:[#allocation5] sm:$0xff]  ;;  %v70_v9 = vmul.f32 %v54_v3, %v54_v3  ;;  %v60_v11 = vld [vmem:[#allocation5 + $0x8] sm:$0xff]  ;;  %v61_v12 = vld [vmem:[#allocation5 + $0x10] sm:$0xff]  ;;  %v71_v18 = vmul.f32 %v55_v7, %v55_v7  ;;  %s243_s20 = scalar_lea.vmem %s184_s1, 128  ;;  %p248_p11 = scmp.lt.s32.totalorder %s184_s1, %s184_s1 }
  0x1c   :  { %v75_v10 = vadd.f32 %v68_v5, %v67_v4  ;;  %v62_v13 = vld [vmem:[#allocation5 + $0x18] sm:$0xff]  ;;  %v86_v14 = vmul.f32 %v59_v8, %v59_v8  ;;  %v56_v15 = vld [vmem:[#allocation2 + $0x28] sm:$0xff]  ;;  %v87_v16 = vmul.f32 %v60_v11, %v60_v11  ;;  %v88_v17 = vmul.f32 %v61_v12, %v61_v12  ;;  %v63_v20 = vld [vmem:[#allocation5 + $0x20] sm:$0xff]  ;;  %p244_p10 = scmp.ne.s32.totalorder %s184_s1, %s243_s20  ;;  %p249_p12 = scmp.lt.s32.totalorder %s243_s20, %s243_s20 }
  0x1d   :  { %v57_v21 = vld [vmem:[#allocation2 + $0x30] sm:$0xff]  ;;  %v89_v22 = vmul.f32 %v62_v13, %v62_v13  ;;  %v72_v24 = vmul.f32 %v56_v15, %v56_v15  ;;  %v64_v26 = vld [vmem:[#allocation5 + $0x28] sm:$0xff]  ;;  %v58_v27 = vld [vmem:[#allocation2 + $0x38] sm:$0xff]  ;;  %v90_v28 = vmul.f32 %v63_v20, %v63_v20 }
  0x1e   :  { %v76_v19 = vadd.f32 %v75_v10, %v69_v6  ;;  %v94_v23 = vadd.f32 %v87_v16, %v86_v14  ;;  %v73_v30 = vmul.f32 %v57_v21, %v57_v21  ;;  %v65_v32 = vld [vmem:[#allocation5 + $0x30] sm:$0xff]  ;;  %v91_v33 = vmul.f32 %v64_v26, %v64_v26  ;;  %v66_v37 = vld [vmem:[#allocation5 + $0x38] sm:$0xff]  ;;  %p250_p13 = por %p249_p12, %p248_p11 }
  0x1f   :  { %v74_v35 = vmul.f32 %v58_v27, %v58_v27  ;;  %v92_v38 = vmul.f32 %v65_v32, %v65_v32  ;;  %v93_v41 = vmul.f32 %v66_v37, %v66_v37 }
  0x20   :  { %v77_v25 = vadd.f32 %v76_v19, %v70_v9  ;;  %v95_v29 = vadd.f32 %v94_v23, %v88_v17  ;;  %p251_p0 = pnand %p250_p13, %p244_p10 }
  0x22   :  { %v78_v31 = vadd.f32 %v77_v25, %v71_v18  ;;  %v96_v34 = vadd.f32 %v95_v29, %v89_v22 }
  0x24   :  { %v79_v36 = vadd.f32 %v78_v31, %v72_v24  ;;  %v97_v39 = vadd.f32 %v96_v34, %v90_v28 }
  0x26   :  { %v80_v40 = vadd.f32 %v79_v36, %v73_v30  ;;  %v98_v42 = vadd.f32 %v97_v39, %v91_v33 }
  0x28   :  { %v81_v43 = vadd.f32 %v80_v40, %v74_v35  ;;  %v99_v44 = vadd.f32 %v98_v42, %v92_v38 }
  0x2a   :  { %82 = vadd.xlane.f32.xlu0 %v81_v43  ;;  %v100_v45 = vadd.f32 %v99_v44, %v93_v41 }
  0x2e   :  { %101 = vadd.xlane.f32.xlu0 %v100_v45 }
  0xb3   :  { %v83_v46 = vpop.xlane.xlu0 %82 }
  0xb4   :  { %v84_v47 = vmax.f32 %v83_v46, 1e-24 }
  0xb6   :  { %199 = vrsqrt.f32 %v84_v47 }
  0xb7   :  { %v102_v48 = vpop.xlane.xlu0 %101 }
  0xb8   :  { %v103_v49 = vmax.f32 %v102_v48, 1e-24 }
  0xba   :  { %201 = vrsqrt.f32 %v103_v49 }
  0xc3   :  { %v200_v50 = vpop.eup %199 }
  0xc4   :  { %v105_v52 = vmul.f32 %v200_v50, %v51_v0  ;;  %v106_v53 = vmul.f32 %v200_v50, %v52_v1  ;;  %v107_v54 = vmul.f32 %v200_v50, %v53_v2  ;;  %v108_v55 = vmul.f32 %v200_v50, %v54_v3 }
  0xc5   :  { %v109_v60 = vmul.f32 %v200_v50, %v55_v7  ;;  %v110_v9 = vmul.f32 %v200_v50, %v56_v15  ;;  %v111_v1 = vmul.f32 %v200_v50, %v57_v21 }
  0xc7   :  { %v202_v51 = vpop.eup %201 }
  0xc8   :  { %v113_v56 = vmul.f32 %v202_v51, %v59_v8  ;;  %v114_v57 = vmul.f32 %v202_v51, %v60_v11  ;;  %v115_v58 = vmul.f32 %v202_v51, %v61_v12  ;;  %v116_v59 = vmul.f32 %v202_v51, %v62_v13 }
  0xc9   :  { %v117_v61 = vmul.f32 %v202_v51, %v63_v20  ;;  %v118_v62 = vmul.f32 %v202_v51, %v64_v26  ;;  %v119_v10 = vmul.f32 %v202_v51, %v65_v32  ;;  %v120_v2 = vmul.f32 %v202_v51, %v66_v37 }
  0xca   :  { %v121_v63 = vsub.f32 %v105_v52, %v113_v56  ;;  %v122_v4 = vsub.f32 %v106_v53, %v114_v57  ;;  %v123_v5 = vsub.f32 %v107_v54, %v115_v58  ;;  %v124_v6 = vsub.f32 %v108_v55, %v116_v59 }
  0xcb   :  { %v125_v14 = vsub.f32 %v109_v60, %v117_v61  ;;  %v126_v3 = vsub.f32 %v110_v9, %v118_v62  ;;  %v112_v13 = vmul.f32 %v200_v50, %v58_v27  ;;  %v127_v7 = vsub.f32 %v111_v1, %v119_v10 }
  0xcc   :  { %v129_v16 = vadd.f32 1e-06, %v121_v63  ;;  %v130_v17 = vadd.f32 1e-06, %v122_v4  ;;  %v131_v0 = vadd.f32 1e-06, %v123_v5  ;;  %v156_v27 = vlaneseq }
  0xcd   :  { %v132_v8 = vadd.f32 1e-06, %v124_v6  ;;  %v133_v18 = vadd.f32 1e-06, %v125_v14  ;;  %v128_v22 = vsub.f32 %v112_v13, %v120_v2  ;;  %v134_v23 = vadd.f32 1e-06, %v126_v3 }
  0xce   :  { %v137_v11 = vmul.f32 %v129_v16, %v129_v16  ;;  %v138_v12 = vmul.f32 %v130_v17, %v130_v17  ;;  %v139_v19 = vmul.f32 %v131_v0, %v131_v0  ;;  %v135_v25 = vadd.f32 1e-06, %v127_v7 }
  0xcf   :  { %v140_v24 = vmul.f32 %v132_v8, %v132_v8  ;;  %v141_v26 = vmul.f32 %v133_v18, %v133_v18  ;;  %v136_v29 = vadd.f32 1e-06, %v128_v22  ;;  %v142_v30 = vmul.f32 %v134_v23, %v134_v23 }
  0xd0   :  { %v145_v20 = vadd.f32 %v138_v12, %v137_v11  ;;  %v143_v31 = vmul.f32 %v135_v25, %v135_v25  ;;  %v157_v36 = vshrl.u32 %v156_v27, 7 }
  0xd1   :  { %v144_v33 = vmul.f32 %v136_v29, %v136_v29 }
  0xd2   :  { %v146_v15 = vadd.f32 %v145_v20, %v139_v19  ;;  %vm160_vm0 = vcmp.lt.s32.totalorder %v157_v36, 2 }
  0xd4   :  { %v147_v28 = vadd.f32 %v146_v15, %v140_v24 }
  0xd6   :  { %v148_v21 = vadd.f32 %v147_v28, %v141_v26 }
  0xd8   :  { %v149_v32 = vadd.f32 %v148_v21, %v142_v30 }
  0xda   :  { %v150_v34 = vadd.f32 %v149_v32, %v143_v31 }
  0xdc   :  { %v151_v35 = vadd.f32 %v150_v34, %v144_v33 }
  0xde   :  { %152 = vadd.xlane.f32.xlu1 %v151_v35 }
 0x167   :  { %v153_v37 = vpop.xlane.xlu1 %152 }
 0x168   :  { %v161_v38 = vsel %vm160_vm0, %v153_v37, 0.0 }
 0x169   :  { %v164_v39 = vsel %vm163_vm1, %v161_v38, 0.0 }
 0x16a   :  { %165 = vadd.xlane.f32.xlu1 %v164_v39 }
 0x1f3   :  { %v166_v40 = vpop.xlane.xlu1 %165 }
 0x1f4   :  { %v167_v41 = vrot.slane %v166_v40, 4 }
 0x1f6   :  { %v168_v42 = vadd.f32 %v167_v41, %v166_v40 }
 0x1f8   :  { %v169_v43 = vrot.slane %v168_v42, 2 }
 0x1fa   :  { %v170_v44 = vadd.f32 %v169_v43, %v168_v42 }
 0x1fc   :  { %v171_v45 = vrot.slane %v170_v44, 1 }
 0x1fe   :  { %v172_v46 = vadd.f32 %v171_v45, %v170_v44 }
 0x200   :  { %193 = vpush %v172_v46 }
 0x231   :  { %s194_s19 = spop %193 }
 0x232   :  { %v174_v47 = vstv %s194_s19 }
 0x233   :  { %176 = vst [vmem:[#allocation7] sm:$0xff] %v174_v47 }
 0x234   :  { %254 = shalt.err (!%p251_p0)
}
 0x235   :  { %186 = dma.vmem_to_hbm [thread:$0]  %s184_s1, 128, %s298_s2, [#allocation4]  }
 0x236   :  { %267 = dma.done.wait [#allocation4], 128  }
 0x237   :  { %268 = vsyncadd [#allocation4], 4294967168 }
 0x238   :  { %190 = vsyncpa [#allocation3], 1 }
 0x239   :  { %191 = vsyncpa [#allocation6], 1 }
 0x23a   :  { %192 = vsyncpa [#allocation4], 1 }

</bundles_post_ra>
